<compile_context>
chip_gen: v7x
topology: tpu7x:2x2x1
jax: 0.10.0
libtpu: 0.0.40
codegen_flags: <defaults>
</compile_context>

<pallas_src>
import functools

import jax
import jax.numpy as jnp
from jax.experimental import pallas as pl
from jax.experimental.pallas import tpu as pltpu


# ---------------------------------------------------------------------------
# Kernels
# ---------------------------------------------------------------------------

def _excite(pool, w1t, w2t, activation):
    """pool: (M, C) f32 -> gate: (M, C) f32 (Linear -> act -> Linear -> h_sigmoid)."""
    h = jnp.dot(pool, w1t, preferred_element_type=jnp.float32)
    if activation == "relu":
        h = jnp.maximum(h, 0.0)
    else:  # h_swish
        h = h * (jnp.clip(h + 3.0, 0.0, 6.0) * (1.0 / 6.0))
    g = jnp.dot(h, w2t, preferred_element_type=jnp.float32)
    return jnp.clip(g + 3.0, 0.0, 6.0) * (1.0 / 6.0)  # h_sigmoid


def se_fused_kernel(x_ref, w1t_ref, w2t_ref, o_ref, *, activation):
    # x_ref: (Bblk, C, HW)   w1t_ref: (C, Cr)   w2t_ref: (Cr, C)
    pool = jnp.mean(x_ref[...].astype(jnp.float32), axis=-1)       # (Bblk, C) f32 acc
    gate = _excite(pool, w1t_ref[...], w2t_ref[...], activation)   # (Bblk, C) f32
    # Scale in the input dtype (bf16 stays bf16 on the VPU; f32 unchanged).
    o_ref[...] = x_ref[...] * gate.astype(o_ref.dtype)[:, :, None]


def se_gate_kernel(x_ref, w1t_ref, w2t_ref, gate_ref, sum_ref, *,
                   activation, hw_total, hw_blk, ragged_hw):
    # Grid axis: HW blocks (reduction).  x_ref: (B, C, hw_blk).
    j = pl.program_id(0)

    @pl.when(j == 0)
    def _():
        sum_ref[...] = jnp.zeros_like(sum_ref)

    xb = x_ref[...].astype(jnp.float32)
    if ragged_hw:
        # Mask the padded lanes of the ragged last HW block before pooling.
        valid = hw_total - j * hw_blk
        lane = jax.lax.broadcasted_iota(jnp.int32, xb.shape, 2)
        xb = jnp.where(lane < valid, xb, 0.0)
    sum_ref[...] += jnp.sum(xb, axis=-1)                           # (B, C)

    @pl.when(j == pl.num_programs(0) - 1)
    def _():
        pool = sum_ref[...] * (1.0 / hw_total)
        gate_ref[...] = _excite(pool, w1t_ref[...], w2t_ref[...],
                                activation).astype(gate_ref.dtype)


def se_scale_kernel(gate_ref, x_ref, o_ref):
    # gate_ref: (B, C) f32,  x_ref / o_ref: (B, C, hw_blk)
    o_ref[...] = x_ref[...] * gate_ref[...].astype(o_ref.dtype)[:, :, None]


# ---------------------------------------------------------------------------
# Tiling / VMEM planning
# ---------------------------------------------------------------------------

def _vmem_capacity_bytes():
    try:
        cap = getattr(pltpu.get_tpu_info(), "vmem_capacity_bytes", None)
        if cap:
            return int(cap)
    except Exception:
        pass
    return 64 << 20  # conservative: v7x-class per-TensorCore VMEM


def _tiling_plan(slab_target_override=None):
    cap = _vmem_capacity_bytes()
    if cap <= (64 << 20):          # v7x: 64 MiB VMEM / TC, 3.2 TB/s HBM
        slab_target, vmem_ceiling = 6 << 20, 48 << 20
    else:                          # v5e / v6e: 128 MiB VMEM
        slab_target, vmem_ceiling = 8 << 20, 64 << 20
    if slab_target_override is not None:
        slab_target = int(slab_target_override)
    return slab_target, vmem_ceiling, cap


def _fused_batch_block(B, per_batch_bytes, slab_target):
    """Largest batch block whose slab fits `slab_target`, keeping >= 4 grid
    steps when B allows (pipelining + megacore).  Does NOT require bblk | B
    (ragged last block is fine); a divisor of B is only preferred if it
    shrinks the slab by < 25% (avoids wasted DMA on the ragged tail)."""
    bblk = max(1, slab_target // max(per_batch_bytes, 1))
    if B >= 4:
        bblk = min(bblk, max(1, B // 4))
    bblk = min(bblk, B)
    d = bblk
    while d >= 1 and d * 4 >= bblk * 3:
        if B % d == 0:
            return d
        d -= 1
    return bblk


def _hw_block(HW, row_bytes, slab_target):
    """Lane-dense HW block (multiple of 128) whose (B, C, hw_blk) slab fits
    `slab_target`."""
    if HW <= 128:
        return HW
    max_lanes = max(128, ((slab_target // max(row_bytes, 1)) // 128) * 128)
    return int(min(max_lanes, (HW // 128) * 128))


# ---------------------------------------------------------------------------
# Wrapper
# ---------------------------------------------------------------------------

def se_layer(x, w1, w2, *, activation="relu", force_split=False,
             slab_target_bytes=None):
    """x: (B, C, H, W); w1: (C//r, C); w2: (C, C//r).  Bias-free Linears."""
    B, C, H, W = x.shape
    HW = H * W
    Cr = w1.shape[0]
    itemsize = jnp.dtype(x.dtype).itemsize

    x_flat = x.reshape(B, C, HW)
    # Pre-transpose the (tiny) weights so the in-kernel matmuls need no
    # transpose/relayout: h = pool @ w1t, gate = h @ w2t.
    w1t = jnp.transpose(w1)    # (C, Cr)
    w2t = jnp.transpose(w2)    # (Cr, C)
    w_bytes = (w1t.size + w2t.size) * jnp.dtype(w1.dtype).itemsize

    slab_target, vmem_ceiling, vmem_cap = _tiling_plan(slab_target_bytes)
    per_batch_bytes = C * HW * itemsize
    total_bytes = B * per_batch_bytes

    # NOTE: for production spatial sizes where H*W is not a multiple of 128
    # (7x7, 14x14, ...), pad the flattened spatial axis to the next multiple
    # of 128 outside the kernel to keep output stores lane-dense.

    use_split = force_split or (B < 4 and total_bytes > slab_target and HW >= 256)

    if not use_split:
        # ---- fused batch-blocked path --------------------------------------
        bblk = _fused_batch_block(B, per_batch_bytes, slab_target)
        slab_bytes = bblk * per_batch_bytes
        grid = (pl.cdiv(B, bblk),)

        # 2 double-buffered input slabs + 2 output slabs + weights + headroom.
        needed = 4 * slab_bytes + 4 * w_bytes + (2 << 20)
        vmem_limit = max(needed, 16 << 20)
        if vmem_limit > vmem_ceiling:
            vmem_limit = min(vmem_limit, vmem_cap - (8 << 20))
        vmem_limit = int(vmem_limit)

        cost = pl.CostEstimate(
            flops=int(2 * B * C * HW + 4 * B * C * Cr),
            transcendentals=0,
            bytes_accessed=int(2 * total_bytes + 2 * w_bytes),
        )

        out = pl.pallas_call(
            functools.partial(se_fused_kernel, activation=activation),
            out_shape=jax.ShapeDtypeStruct((B, C, HW), x.dtype),
            grid_spec=pltpu.PrefetchScalarGridSpec(
                num_scalar_prefetch=0,
                grid=grid,
                in_specs=[
                    pl.BlockSpec((bblk, C, HW), lambda b: (b, 0, 0)),
                    pl.BlockSpec((C, Cr), lambda b: (0, 0)),
                    pl.BlockSpec((Cr, C), lambda b: (0, 0)),
                ],
                out_specs=pl.BlockSpec((bblk, C, HW), lambda b: (b, 0, 0)),
            ),
            compiler_params=pltpu.CompilerParams(
                dimension_semantics=("parallel",),
                vmem_limit_bytes=vmem_limit,
            ),
            cost_estimate=cost,
        )(x_flat, w1t, w2t)
        return out.reshape(B, C, H, W)

    # ---- small-batch split path: gate kernel + HW-tiled scale kernel -------
    hw_blk = _hw_block(HW, B * C * itemsize, slab_target)
    n_hw = pl.cdiv(HW, hw_blk)
    ragged_hw = (HW % hw_blk) != 0
    slab_bytes = B * C * hw_blk * itemsize
    needed = 4 * slab_bytes + 4 * w_bytes + 8 * B * C * 4 + (2 << 20)
    vmem_limit = int(min(max(needed, 16 << 20), vmem_ceiling))

    gate = pl.pallas_call(
        functools.partial(se_gate_kernel, activation=activation,
                          hw_total=HW, hw_blk=hw_blk, ragged_hw=ragged_hw),
        out_shape=jax.ShapeDtypeStruct((B, C), jnp.float32),
        grid_spec=pltpu.PrefetchScalarGridSpec(
            num_scalar_prefetch=0,
            grid=(n_hw,),
            in_specs=[
                pl.BlockSpec((B, C, hw_blk), lambda j: (0, 0, j)),
                pl.BlockSpec((C, Cr), lambda j: (0, 0)),
                pl.BlockSpec((Cr, C), lambda j: (0, 0)),
            ],
            out_specs=pl.BlockSpec((B, C), lambda j: (0, 0)),
            scratch_shapes=[pltpu.VMEM((B, C), jnp.float32)],
        ),
        compiler_params=pltpu.CompilerParams(
            dimension_semantics=("arbitrary",),
            vmem_limit_bytes=vmem_limit,
        ),
    )(x_flat, w1t, w2t)

    out = pl.pallas_call(
        se_scale_kernel,
        out_shape=jax.ShapeDtypeStruct((B, C, HW), x.dtype),
        grid_spec=pltpu.PrefetchScalarGridSpec(
            num_scalar_prefetch=0,
            grid=(n_hw,),
            in_specs=[
                pl.BlockSpec((B, C), lambda j: (0, 0)),
                pl.BlockSpec((B, C, hw_blk), lambda j: (0, 0, j)),
            ],
            out_specs=pl.BlockSpec((B, C, hw_blk), lambda j: (0, 0, j)),
        ),
        compiler_params=pltpu.CompilerParams(
            dimension_semantics=("parallel",),
            vmem_limit_bytes=vmem_limit,
        ),
    )(gate, x_flat)
    return out.reshape(B, C, H, W)


# ---------------------------------------------------------------------------
# Pure-JAX reference (matches the PyTorch forward)
# ---------------------------------------------------------------------------

def se_layer_ref(x, w1, w2, *, activation="relu"):
    pool = jnp.mean(x.astype(jnp.float32), axis=(2, 3))            # (B, C)
    h = pool @ w1.T
    if activation == "relu":
        h = jnp.maximum(h, 0.0)
    else:
        h = h * (jnp.clip(h + 3.0, 0.0, 6.0) / 6.0)
    g = h @ w2.T
    gate = jnp.clip(g + 3.0, 0.0, 6.0) / 6.0
    return (x.astype(jnp.float32) * gate[:, :, None, None]).astype(x.dtype)


if __name__ == "__main__":
    key = jax.random.PRNGKey(0)
    kx, k1, k2, kx2, kx3 = jax.random.split(key, 5)

    # Config 1: fused batch-blocked path.  HW = 256 keeps the lane axis a
    # multiple of 128 -> unmasked stores.
    B, C, H, W, reduction = 8, 64, 16, 16, 16
    Cr = C // reduction
    x = jax.random.normal(kx, (B, C, H, W), dtype=jnp.float32)
    w1 = jax.random.normal(k1, (Cr, C), dtype=jnp.float32) * 0.1   # (C//r, C)
    w2 = jax.random.normal(k2, (C, Cr), dtype=jnp.float32) * 0.1   # (C, C//r)

    out = jax.block_until_ready(se_layer(x, w1, w2))
    ref = se_layer_ref(x, w1, w2)
    assert jnp.allclose(out, ref, atol=1e-5, rtol=1e-5), "relu mismatch"

    out_hs = jax.block_until_ready(se_layer(x, w1, w2, activation="hswish"))
    ref_hs = se_layer_ref(x, w1, w2, activation="hswish")
    assert jnp.allclose(out_hs, ref_hs, atol=1e-5, rtol=1e-5), "hswish mismatch"

    # Config 2: ragged batch blocking (bblk does not divide B).
    x2 = jax.random.normal(kx2, (16, C, H, W), dtype=jnp.float32)
    out2 = jax.block_until_ready(se_layer(x2, w1, w2, slab_target_bytes=192 * 1024))
    assert jnp.allclose(out2, se_layer_ref(x2, w1, w2), atol=1e-5, rtol=1e-5), \
        "ragged-batch mismatch"

    # Config 3: small-batch split path (gate kernel + HW-tiled scale kernel).
    x3 = jax.random.normal(kx3, (2, C, H, W), dtype=jnp.float32)
    out3 = jax.block_until_ready(
        se_layer(x3, w1, w2, force_split=True, slab_target_bytes=64 * 1024))
    assert jnp.allclose(out3, se_layer_ref(x3, w1, w2), atol=1e-5, rtol=1e-5), \
        "split-path mismatch"

    print("KERNEL_OK")
</pallas_src>

<mosaic_0001>
module attributes {stable_mosaic.version = 11 : i64} {
  func.func @se_fused_kernel(%arg0: i32, %arg1: memref<2x64x256xf32, #tpu.memory_space<vmem>>, %arg2: memref<64x4xf32, #tpu.memory_space<vmem>>, %arg3: memref<4x64xf32, #tpu.memory_space<vmem>>, %arg4: memref<2x64x256xf32, #tpu.memory_space<vmem>>) attributes {dimension_semantics = [#tpu.dimension_semantics<parallel>], iteration_bounds = array<i64: 4>, scalar_prefetch = 0 : i64, scratch_operands = 0 : i64, tpu.core_type = #tpu.core_type<tc>, window_params = [{transform_indices = @transform_0, window_bounds = array<i64: 2, 64, 256>}, {pipeline_mode = #tpu.pipeline_mode<synchronous>, transform_indices = @transform_1, window_bounds = array<i64: 64, 4>}, {pipeline_mode = #tpu.pipeline_mode<synchronous>, transform_indices = @transform_2, window_bounds = array<i64: 4, 64>}, {transform_indices = @transform_3, window_bounds = array<i64: 2, 64, 256>}]} {
    %c0 = arith.constant 0 : index
    %c0_0 = arith.constant 0 : index
    %c0_1 = arith.constant 0 : index
    %0 = vector.load %arg1[%c0, %c0_0, %c0_1] : memref<2x64x256xf32, #tpu.memory_space<vmem>>, vector<2x64x256xf32>
    %cst = arith.constant dense<0.000000e+00> : vector<2x64xf32>
    %1 = vector.multi_reduction <add>, %0, %cst [2] : vector<2x64x256xf32> to vector<2x64xf32>
    %cst_2 = arith.constant 2.560000e+02 : f32
    %2 = vector.broadcast %cst_2 : f32 to vector<2x64xf32>
    %3 = arith.divf %1, %2 : vector<2x64xf32>
    %c0_3 = arith.constant 0 : index
    %c0_4 = arith.constant 0 : index
    %4 = vector.load %arg2[%c0_3, %c0_4] : memref<64x4xf32, #tpu.memory_space<vmem>>, vector<64x4xf32>
    %c0_5 = arith.constant 0 : index
    %c0_6 = arith.constant 0 : index
    %5 = vector.load %arg3[%c0_5, %c0_6] : memref<4x64xf32, #tpu.memory_space<vmem>>, vector<4x64xf32>
    %cst_7 = arith.constant dense<0.000000e+00> : vector<2x4xf32>
    %6 = tpu.matmul %3, %4, %cst_7 {dimension_numbers = #tpu.dot_dimension_numbers<[1], [0], [0], [1], [0, 0, 1, 1], [], []>} : vector<2x64xf32>, vector<64x4xf32>, vector<2x4xf32> -> vector<2x4xf32>
    %cst_8 = arith.constant 0.000000e+00 : f32
    %7 = vector.broadcast %cst_8 : f32 to vector<2x4xf32>
    %8 = arith.maximumf %6, %7 : vector<2x4xf32>
    %cst_9 = arith.constant dense<0.000000e+00> : vector<2x64xf32>
    %9 = tpu.matmul %8, %5, %cst_9 {dimension_numbers = #tpu.dot_dimension_numbers<[1], [0], [0], [1], [0, 0, 1, 1], [], []>} : vector<2x4xf32>, vector<4x64xf32>, vector<2x64xf32> -> vector<2x64xf32>
    %cst_10 = arith.constant 3.000000e+00 : f32
    %10 = vector.broadcast %cst_10 : f32 to vector<2x64xf32>
    %11 = arith.addf %9, %10 : vector<2x64xf32>
    %cst_11 = arith.constant 0.000000e+00 : f32
    %cst_12 = arith.constant 6.000000e+00 : f32
    %12 = vector.broadcast %cst_11 : f32 to vector<2x64xf32>
    %13 = arith.maximumf %12, %11 : vector<2x64xf32>
    %14 = vector.broadcast %cst_12 : f32 to vector<2x64xf32>
    %15 = arith.minimumf %14, %13 : vector<2x64xf32>
    %cst_13 = arith.constant 0.166666672 : f32
    %16 = vector.broadcast %cst_13 : f32 to vector<2x64xf32>
    %17 = arith.mulf %15, %16 : vector<2x64xf32>
    %c0_14 = arith.constant 0 : index
    %c0_15 = arith.constant 0 : index
    %c0_16 = arith.constant 0 : index
    %18 = vector.load %arg1[%c0_14, %c0_15, %c0_16] : memref<2x64x256xf32, #tpu.memory_space<vmem>>, vector<2x64x256xf32>
    %19 = vector.shape_cast %17 : vector<2x64xf32> to vector<2x64x1xf32>
    %20 = vector.broadcast %19 : vector<2x64x1xf32> to vector<2x64x256xf32>
    %21 = arith.mulf %18, %20 : vector<2x64x256xf32>
    %c0_17 = arith.constant 0 : index
    %c0_18 = arith.constant 0 : index
    %c0_19 = arith.constant 0 : index
    %22 = vector.load %arg4[%c0_17, %c0_18, %c0_19] : memref<2x64x256xf32, #tpu.memory_space<vmem>>, vector<2x64x256xf32>
    tpu.vector_store %arg4[%c0_17, %c0_18, %c0_19], %21 {strides = array<i32>} : memref<2x64x256xf32, #tpu.memory_space<vmem>>, vector<2x64x256xf32>,
    return
  }
  func.func @transform_0(%arg0: i32) -> (i32, i32, i32) {
    %c0_i32 = arith.constant 0 : i32
    %c0_i32_0 = arith.constant 0 : i32
    %c0_i32_1 = arith.constant 0 : i32
    return %arg0, %c0_i32, %c0_i32_0 : i32, i32, i32
  }
  func.func @transform_1(%arg0: i32) -> (i32, i32) {
    %c0_i32 = arith.constant 0 : i32
    %c0_i32_0 = arith.constant 0 : i32
    %c0_i32_1 = arith.constant 0 : i32
    return %c0_i32, %c0_i32_0 : i32, i32
  }
  func.func @transform_2(%arg0: i32) -> (i32, i32) {
    %c0_i32 = arith.constant 0 : i32
    %c0_i32_0 = arith.constant 0 : i32
    %c0_i32_1 = arith.constant 0 : i32
    return %c0_i32, %c0_i32_0 : i32, i32
  }
  func.func @transform_3(%arg0: i32) -> (i32, i32, i32) {
    %c0_i32 = arith.constant 0 : i32
    %c0_i32_0 = arith.constant 0 : i32
    %c0_i32_1 = arith.constant 0 : i32
    return %arg0, %c0_i32, %c0_i32_0 : i32, i32, i32
  }
}

</mosaic_0001>

<bundles_post_ra>
// kernel: tpu_custom_call.1
= control target key start
LH: loop header
LB: loop body
LE: loop exit
PB: predicated region body
PF: predicated region fallthrough
CT: control target
= control target key end

     0   :  { %8 = vsyncpa [#allocation3], 0  ;;  %s1449_s0 = inlined_call_operand.hbm [shape: f32[8,64,256], index: 0, kind: input, shape index: {}]   ;;  %s1450_s1 = inlined_call_operand.vmem [shape: f32[64,4], index: 1, kind: input, shape index: {}]   ;;  %s1451_s2 = inlined_call_operand.vmem [shape: f32[4,64], index: 2, kind: input, shape index: {}]   ;;  %s1452_s3 = inlined_call_operand.hbm [shape: f32[8,64,256], index: 3, kind: output, shape index: {}]  }
   0x1   :  { %10 = vsyncpa [#allocation3 + $0x1], 0 }
   0x2   :  { %11 = vsyncpa [#allocation4], 0 }
   0x3   :  { %13 = vsyncpa [#allocation4 + $0x1], 0  ;;  %s1037_s12 = smov 0   ;;  %s1039_s13 = smov 0  }
   0x4   :  { %s1041_s14 = smov 0   ;;  %s1043_s15 = smov 0  }
   0x5 LB: > { %s1058_s16 = sadd.s32 4294967295, %s1006_s15   ;;  %s787_s17 = sadd.s32 4294967294, %s1006_s15   ;;  %s1006_s15 = sphi %s1043_s15, %s1485_s15   ;;  %s1002_s14 = sphi %s1041_s14, %s1484_s14   ;;  %s998_s13 = sphi %s1039_s13, %s1483_s13   ;;  %s994_s12 = sphi %s1037_s12, %s1482_s12  }
   0x6   : > { %s1062_s18 = sadd.s32 1, %s1006_s15   ;;  %s26_s19 = sadd.s32 1, %s1002_s14 }
   0x7   : > { %s23_s20 = ssub.s32 %s1006_s15, %s1062_s18  ;;  %p33_p0 = scmp.ne.s32.totalorder %s1002_s14, %s998_s13 }
   0x8   : > { %p24_p1 = scmp.eq.s32.totalorder %s23_s20, 0  ;;  %p34_p2 = scmp.eq.s32.totalorder %s1006_s15, 0 }
   0x9   : > { %p39_p3 = scmp.ne.s32.totalorder %s998_s13, %s994_s12  ;;  %p40_p4 = scmp.eq.s32.totalorder %s1058_s16, 0 }
   0xa   : > { %s1074_s21 = scalar_select %p24_p1, %s1002_s14, %s26_s19  }
   0xb   : > { %p1076_p5 = por %p34_p2, %p33_p0  ;;  %p1080_p6 = por %p40_p4, %p39_p3 }
   0xc   : > { %p105_p7 = scmp.eq.s32.totalorder %s1058_s16, 3  ;;  %p111_p8 = scmp.eq.s32.totalorder %s787_s17, 3 }
   0xd   : > { %p869_p9 = scmp.lt.s32.totalorder %s1006_s15, 4  ;;  %s137_s26 = sand.u32 1, %s1002_s14  }
   0xe   : > { %p1086_p10 = por %p105_p7, %p33_p0  ;;  %p1090_p11 = por %p111_p8, %p39_p3 }
   0xf   : > { %s807_s27 = sshll.u32 %s1006_s15, 12  ;;  %s790_s28 = sshll.u32 %s137_s26, 8 }
  0x10   : > { %s1463_s24 = scalar_select %p1086_p10, 1, 0 }
  0x11   : > { %s1464_s25 = scalar_select %p1090_p11, 1, 0 }
  0x12   : > { %s1099_s4 = scalar_lea.hbm %s1449_s0, %s807_s27  ;;  %s141_s5 = scalar_lea.vmem [#allocation2], %s790_s28 }
  0x13   : > { %s149_s6 = sshll.u32 %s141_s5, 4  ;;  %p1103_p12 = pnand %p869_p9, %p1076_p5  ;;  %s1107_s6 = int_to_ptr.vmem [resolvable:$true] %s149_s6 }
  0x14   : > { %s1109_s8 = scalar_lea.sflag [#allocation3], %s137_s26  ;;  %s910_s9 = scalar_lea.hbm %s1099_s4, 4096 }
  0x15   : > { %p911_p13 = scmp.ne.s32.totalorder %s1099_s4, %s910_s9  ;;  %p912_p0 = pneg %p1103_p12 }
  0x16   : > { %s915_s17 = scalar_lea.hbm %s1449_s0, 16384  ;;  %p916_p3 = scmp.lt.u32.totalorder %s1099_s4, %s1449_s0 }
  0x17   : > { %p913_p1 = pnand %p912_p0, %p911_p13  ;;  %p917_p4 = scmp.lt.u32.totalorder %s915_s17, %s910_s9 }
  0x18   : > { %p919_p7 = scmp.lt.u32.totalorder %s910_s9, %s1099_s4 }
  0x19   : > { %p914_p2 = pneg %p913_p1  ;;  %p918_p5 = por %p917_p4, %p916_p3 }
  0x1b   : > { %p920_p8 = por %p919_p7, %p918_p5 }
  0x1d   : > { %p921_p9 = pnand %p920_p8, %p914_p2 }
  0x1f   : > { %924 = shalt.err (!%p921_p9)
}
  0x20   : > { %s925_s22 = scalar_lea.vmem %s1107_s6, 4096  ;;  %s1008_s26 = smov [#allocation2]  }
  0x21   : > { %p926_p13 = scmp.ne.s32.totalorder %s1107_s6, %s925_s22  ;;  %s930_s27 = sshll.u32 %s1008_s26, 4  ;;  %s931_s27 = int_to_ptr.vmem [resolvable:$false] %s930_s27 }
  0x22   : > { %s932_s28 = scalar_lea.vmem %s931_s27, 8192  ;;  %p933_p10 = scmp.lt.s32.totalorder %s1107_s6, %s931_s27 }
  0x23   : > { %p928_p1 = pnand %p926_p13, %p912_p0  ;;  %p934_p3 = scmp.lt.s32.totalorder %s932_s28, %s925_s22 }
  0x25   : > { %p929_p11 = pneg %p928_p1  ;;  %p935_p4 = por %p934_p3, %p933_p10 }
  0x27   : > { %p936_p5 = pnand %p935_p4, %p929_p11 }
  0x29   : > { %939 = shalt.err (!%p936_p5)
}
  0x2a   : > { %s1009_s29 = smov 256   ;;  %s1010_s30 = smov 16  }
  0x2b   : > { %864 = dma.hbm_to_vmem [thread:$0]  (!%p1103_p12), %s1099_s4, 4096, %s1107_s6, %s1109_s8, %s1009_s29, %s1009_s29, %s1010_s30  }
  0x2c   : > { %p794_p0 = scmp.ge.s32.totalorder %s1006_s15, 1  ;;  %p157_p2 = scmp.lt.s32.totalorder %s1006_s15, 5 }
  0x2e   : > { %p158_p7 = pnand %p794_p0, %p157_p2 }
  0x30   : > { %161 = sbr.rel (%p158_p7) target bundleno = 839 (0x347), region = 32 }
  0x37   : > { %s1140_s5 = sand.u32 1, %s998_s13  }
  0x38   : > { %s795_s9 = sshll.u32 %s1140_s5, 8  ;;  %s164_s10 = scalar_lea.sflag [#allocation3], %s1140_s5 }
  0x39   : > { %s1146_s11 = scalar_lea.vmem [#allocation2], %s795_s9 }
  0x3a   : > { %985 = dma.done.wait (%p1080_p6), %s164_s10, 4096  }
  0x3b   : > { %987 = vsyncadd (%p1080_p6), %s164_s10, 4294963200  ;;  %v1153_v0 = vld [vmem:[%s1146_s11 + $0x80] sm:$0xff]  ;;  %v1156_v1 = vld [vmem:[%s1146_s11 + $0x88] sm:$0xff]  ;;  %v1011_v51 = vmov 0.0|0.0   ;;  %vm1012_vm0 = vmmov 0   ;;  %v1013_v61 = vmov 0.0  }
  0x3c   : > { %v1159_v2 = vld [vmem:[%s1146_s11] sm:$0xff]  ;;  %v248_v3 = vadd.f32 %v1156_v1, %v1153_v0  ;;  %v1164_v4 = vld [vmem:[%s1146_s11 + $0x8] sm:$0xff]  ;;  %v1167_v5 = vld [vmem:[%s1146_s11 + $0x90] sm:$0xff]  ;;  %845 = vmatprep.subr.bf16.mxu0 %v1011_v51  ;;  %837 = vmatprep.mubr.msk.f32.mxu0 %vm1012_vm0, %v1013_v61  ;;  %vm325_vm1 = vcmask 130112   ;;  %vm332_vm2 = vcmask 195712   ;;  %vm339_vm3 = vcmask 261312  }
  0x3d   : > { %v1170_v6 = vld [vmem:[%s1146_s11 + $0x98] sm:$0xff]  ;;  %v224_v7 = vadd.f32 %v1164_v4, %v1159_v2  ;;  %v1175_v8 = vld [vmem:[%s1146_s11 + $0x10] sm:$0xff]  ;;  %v1185_v12 = vld [vmem:[%s1146_s11 + $0xa0] sm:$0xff]  ;;  %840 = vmatprep.subr.mxu1 %v1013_v61  ;;  %842 = vmatprep.mubr.msk.f32.mxu1 %vm1012_vm0, %v1013_v61  ;;  %vm346_vm4 = vcmask 326912   ;;  %vm353_vm5 = vcmask 392512   ;;  %vm360_vm6 = vcmask 458112  }
  0x3e   : > { %v1178_v9 = vld [vmem:[%s1146_s11 + $0x18] sm:$0xff]  ;;  %249 = vadd.xlane.f32.xlu1 %v248_v3  ;;  %v251_v10 = vadd.f32 %v1170_v6, %v1167_v5  ;;  %v1188_v13 = vld [vmem:[%s1146_s11 + $0xa8] sm:$0xff]  ;;  %v1191_v14 = vld [vmem:[%s1146_s11 + $0x20] sm:$0xff]  ;;  %vm367_vm7 = vcmask 523712   ;;  %vm408_vm8 = vcmask 1041409   ;;  %vm410_vm9 = vcmask 523264  }
  0x3f   : > { %225 = vadd.xlane.f32.xlu0 %v224_v7  ;;  %v227_v11 = vadd.f32 %v1178_v9, %v1175_v8  ;;  %v1194_v15 = vld [vmem:[%s1146_s11 + $0x28] sm:$0xff]  ;;  %v254_v16 = vadd.f32 %v1188_v13, %v1185_v12  ;;  %v1201_v18 = vld [vmem:[%s1146_s11 + $0xb0] sm:$0xff]  ;;  %v1204_v19 = vld [vmem:[%s1146_s11 + $0xb8] sm:$0xff]  ;;  %vm488_vm10 = vcmask 1043456   ;;  %vm484_vm11 = vcmask 31744   ;;  %s1337_s6 = scalar_lea.vmem [#allocation5], %s795_s9 }
  0x40   : > { %v230_v17 = vadd.f32 %v1194_v15, %v1191_v14  ;;  %1466 = vst [vmem:[#allocation8_spill] sm:$0xff] %v1204_v19  ;;  %v1207_v20 = vld [vmem:[%s1146_s11 + $0x30] sm:$0xff]  ;;  %v1210_v21 = vld [vmem:[%s1146_s11 + $0x38] sm:$0xff]  ;;  %v257_v22 = vadd.f32 %v1204_v19, %v1201_v18  ;;  %v1217_v24 = vld [vmem:[%s1146_s11 + $0xc0] sm:$0xff]  ;;  %s809_s9 = sshll.u32 %s1058_s16, 12  ;;  %s714_s7 = sshll.u32 %s1337_s6, 4  ;;  %s1402_s7 = int_to_ptr.vmem [resolvable:$true] %s714_s7 }
  0x41   : > { %v233_v23 = vadd.f32 %v1210_v21, %v1207_v20  ;;  %v1220_v25 = vld [vmem:[%s1146_s11 + $0xc8] sm:$0xff]  ;;  %v1223_v26 = vld [vmem:[%s1146_s11 + $0x40] sm:$0xff]  ;;  %v1233_v30 = vld [vmem:[%s1146_s11 + $0xd0] sm:$0xff]  ;;  %s1400_s19 = scalar_lea.hbm %s1452_s3, %s809_s9  ;;  %s700_s16 = scalar_lea.sflag [#allocation4], %s1140_s5 }
  0x42   : > { %252 = vadd.xlane.f32.xlu1 %v251_v10  ;;  %v1226_v27 = vld [vmem:[%s1146_s11 + $0x48] sm:$0xff]  ;;  %v260_v28 = vadd.f32 %v1220_v25, %v1217_v24  ;;  %1467 = vst [vmem:[#allocation9_spill] sm:$0xff] %v1233_v30  ;;  %v1236_v31 = vld [vmem:[%s1146_s11 + $0xd8] sm:$0xff]  ;;  %v1239_v32 = vld [vmem:[%s1146_s11 + $0x50] sm:$0xff]  ;;  %v314_v10 = vlaneseq  ;;  %s940_s20 = scalar_lea.vmem %s1402_s7, 4096  ;;  %p1480_p10 = scmp.ne.s32.totalorder %s1463_s24, 0 }
  0x43   : > { %228 = vadd.xlane.f32.xlu0 %v227_v11  ;;  %v236_v29 = vadd.f32 %v1226_v27, %v1223_v26  ;;  %1468 = vst [vmem:[#allocation10_spill] sm:$0xff] %v1236_v31  ;;  %v1242_v33 = vld [vmem:[%s1146_s11 + $0x58] sm:$0xff]  ;;  %v263_v34 = vadd.f32 %v1236_v31, %v1233_v30  ;;  %v1249_v36 = vld [vmem:[%s1146_s11 + $0xe0] sm:$0xff]  ;;  %v1252_v37 = vld [vmem:[%s1146_s11 + $0xe8] sm:$0xff]  ;;  %p941_p6 = scmp.ne.s32.totalorder %s1402_s7, %s940_s20  ;;  %s1014_s22 = smov [#allocation5]  }
  0x44   : > { %v239_v35 = vadd.f32 %v1242_v33, %v1239_v32  ;;  %1469 = vst [vmem:[#allocation11_spill] sm:$0xff] %v1249_v36  ;;  %1470 = vst [vmem:[#allocation12_spill] sm:$0xff] %v1252_v37  ;;  %v1255_v38 = vld [vmem:[%s1146_s11 + $0x60] sm:$0xff]  ;;  %v1258_v39 = vld [vmem:[%s1146_s11 + $0x68] sm:$0xff]  ;;  %v266_v40 = vadd.f32 %v1252_v37, %v1249_v36  ;;  %s944_s26 = sshll.u32 %s1014_s22, 4  ;;  %s945_s26 = int_to_ptr.vmem [resolvable:$false] %s944_s26 }
  0x45   : > { %v242_v41 = vadd.f32 %v1258_v39, %v1255_v38  ;;  %v1265_v42 = vld [vmem:[%s1146_s11 + $0xf0] sm:$0xff]  ;;  %v1268_v43 = vld [vmem:[%s1146_s11 + $0xf8] sm:$0xff]  ;;  %v289_v48 = vld [vmem:[%s1450_s1] sm:$0xff]  ;;  %p942_p11 = pnand %p941_p6, %p1480_p10  ;;  %s946_s27 = scalar_lea.vmem %s945_s26, 8192 }
  0x46   : > { %255 = vadd.xlane.f32.xlu1 %v254_v16  ;;  %1471 = vst [vmem:[#allocation13_spill] sm:$0xff] %v1265_v42  ;;  %1472 = vst [vmem:[#allocation14_spill] sm:$0xff] %v1268_v43  ;;  %v1271_v44 = vld [vmem:[%s1146_s11 + $0x70] sm:$0xff]  ;;  %v1274_v45 = vld [vmem:[%s1146_s11 + $0x78] sm:$0xff]  ;;  %v269_v46 = vadd.f32 %v1268_v43, %v1265_v42  ;;  %p947_p8 = scmp.lt.s32.totalorder %s1402_s7, %s945_s26  ;;  %p948_p9 = scmp.lt.s32.totalorder %s946_s27, %s940_s20 }
  0x47   : > { %231 = vadd.xlane.f32.xlu0 %v230_v17  ;;  %v245_v47 = vadd.f32 %v1274_v45, %v1271_v44  ;;  %v290_v49 = vld [vmem:[%s1450_s1 + $0x8] sm:$0xff]  ;;  %v291_v52 = vld [vmem:[%s1450_s1 + $0x10] sm:$0xff]  ;;  %v292_v53 = vld [vmem:[%s1450_s1 + $0x18] sm:$0xff]  ;;  %v315_v17 = vand.u32 127, %v314_v10  ;;  %p943_p12 = pneg %p942_p11 }
  0x48   : > { %v846_v50 = vpack.c.bf16 %v290_v49, %v289_v48  ;;  %v849_v54 = vpack.c.bf16 %v292_v53, %v291_v52  ;;  %v293_v55 = vld [vmem:[%s1450_s1 + $0x20] sm:$0xff]  ;;  %v294_v56 = vld [vmem:[%s1450_s1 + $0x28] sm:$0xff]  ;;  %v295_v58 = vld [vmem:[%s1450_s1 + $0x30] sm:$0xff]  ;;  %p949_p13 = por %p948_p9, %p947_p8 }
  0x49   : > { %v852_v57 = vpack.c.bf16 %v294_v56, %v293_v55  ;;  %v296_v59 = vld [vmem:[%s1450_s1 + $0x38] sm:$0xff] }
  0x4a   : > { %258 = vadd.xlane.f32.xlu1 %v257_v22  ;;  %847 = vmatpush3.bf16.msra.mxu0 %v846_v50  ;;  %v855_v60 = vpack.c.bf16 %v296_v59, %v295_v58  ;;  %p950_p1 = pnand %p949_p13, %p943_p12 }
  0x4b   : > { %234 = vadd.xlane.f32.xlu0 %v233_v23  ;;  %848 = vmatprep.subr.bf16.mxu0 %v1011_v51  ;;  %v1304_v23 = vshrl.u32 %v314_v10, 7 }
  0x4e   : > { %261 = vadd.xlane.f32.xlu1 %v260_v28  ;;  %850 = vmatpush3.bf16.msra.mxu0 %v849_v54 }
  0x4f   : > { %237 = vadd.xlane.f32.xlu0 %v236_v29  ;;  %851 = vmatprep.subr.bf16.mxu0 %v1011_v51  ;;  %v320_v29 = vadd.s32 4294967288, %v315_v17 }
  0x51   : > { %v323_v49 = vsub.s32 %v320_v29, %v1304_v23 }
  0x52   : > { %264 = vadd.xlane.f32.xlu1 %v263_v34  ;;  %853 = vmatpush3.bf16.msra.mxu0 %v852_v57  ;;  %v327_v34 = vadd.s32 4294967280, %v315_v17 }
  0x53   : > { %240 = vadd.xlane.f32.xlu0 %v239_v35  ;;  %854 = vmatprep.subr.bf16.mxu0 %v1011_v51  ;;  %v334_v35 = vadd.s32 4294967272, %v315_v17  ;;  %v355_v51 = vadd.s32 4294967248, %v315_v17 }
  0x54   : > { %v330_v50 = vsub.s32 %v327_v34, %v1304_v23 }
  0x55   : > { %v337_v53 = vsub.s32 %v334_v35, %v1304_v23 }
  0x56   : > { %267 = vadd.xlane.f32.xlu1 %v266_v40  ;;  %856 = vmatpush3.bf16.msra.mxu0 %v855_v60  ;;  %v341_v40 = vadd.s32 4294967264, %v315_v17 }
  0x57   : > { %243 = vadd.xlane.f32.xlu0 %v242_v41 }
  0x58   : > { %v344_v54 = vsub.s32 %v341_v40, %v1304_v23  ;;  %v362_v40 = vadd.s32 4294967240, %v315_v17 }
  0x5a   : > { %270 = vadd.xlane.f32.xlu1 %v269_v46  ;;  %v348_v46 = vadd.s32 4294967256, %v315_v17 }
  0x5b   : > { %246 = vadd.xlane.f32.xlu0 %v245_v47  ;;  %v318_v47 = vsub.s32 %v315_v17, %v1304_v23  ;;  %v365_v17 = vsub.s32 %v362_v40, %v1304_v23 }
  0x5c   : > { %v351_v57 = vsub.s32 %v348_v46, %v1304_v23 }
  0xcb   : > { %v250_v62 = vpop.xlane.xlu1 %249 }
  0xcc   : > { %v226_v63 = vpop.xlane.xlu0 %225  ;;  %v281_v59 = vmul.f32 0.00390625, %v250_v62 }
  0xcd   : > { %v273_v29 = vmul.f32 0.00390625, %v226_v63 }
  0xce   : > { %v372_v37 = vrot.slane %v281_v59, %v318_v47 }
  0xcf   : > { %v253_v3 = vpop.xlane.xlu1 %252  ;;  %v319_v19 = vrot.slane %v273_v29, %v318_v47 }
  0xd0   : > { %v229_v7 = vpop.xlane.xlu0 %228  ;;  %v282_v52 = vmul.f32 0.00390625, %v253_v3  ;;  %v358_v3 = vsub.s32 %v355_v51, %v1304_v23 }
  0xd1   : > { %v274_v55 = vmul.f32 0.00390625, %v229_v7 }
  0xd2   : > { %v376_v35 = vrot.slane %v282_v52, %v323_v49 }
  0xd3   : > { %v256_v11 = vpop.xlane.xlu1 %255  ;;  %v324_v7 = vrot.slane %v274_v55, %v323_v49 }
  0xd4   : > { %v232_v16 = vpop.xlane.xlu0 %231  ;;  %v283_v56 = vmul.f32 0.00390625, %v256_v11  ;;  %v377_v51 = vsel %vm325_vm1, %v376_v35, %v372_v37  ;;  %v297_v35 = vld [vmem:[%s1451_s2] sm:$0xf] }
  0xd5   : > { %v275_v60 = vmul.f32 0.00390625, %v232_v16  ;;  %v326_v49 = vsel %vm325_vm1, %v324_v7, %v319_v19  ;;  %841 = vmatpush3.msk.msra.mxu1 %vm488_vm10, %v297_v35 }
  0xd6   : > { %v381_v11 = vrot.slane %v283_v56, %v330_v50 }
  0xd7   : > { %v259_v22 = vpop.xlane.xlu1 %258  ;;  %v331_v62 = vrot.slane %v275_v60, %v330_v50 }
  0xd8   : > { %v235_v28 = vpop.xlane.xlu0 %234  ;;  %v284_v61 = vmul.f32 0.00390625, %v259_v22  ;;  %v382_v55 = vsel %vm332_vm2, %v381_v11, %v377_v51 }
  0xd9   : > { %v276_v34 = vmul.f32 0.00390625, %v235_v28  ;;  %v333_v59 = vsel %vm332_vm2, %v331_v62, %v326_v49 }
  0xda   : > { %v386_v16 = vrot.slane %v284_v61, %v337_v53 }
  0xdb   : > { %v262_v41 = vpop.xlane.xlu1 %261  ;;  %v338_v63 = vrot.slane %v276_v34, %v337_v53 }
  0xdc   : > { %v238_v48 = vpop.xlane.xlu0 %237  ;;  %v285_v43 = vmul.f32 0.00390625, %v262_v41  ;;  %v387_v47 = vsel %vm339_vm3, %v386_v16, %v382_v55 }
  0xdd   : > { %v277_v42 = vmul.f32 0.00390625, %v238_v48  ;;  %v340_v37 = vsel %vm339_vm3, %v338_v63, %v333_v59 }
  0xde   : > { %v391_v28 = vrot.slane %v285_v43, %v344_v54 }
  0xdf   : > { %v265_v58 = vpop.xlane.xlu1 %264  ;;  %v345_v52 = vrot.slane %v277_v42, %v344_v54 }
  0xe0   : > { %v241_v10 = vpop.xlane.xlu0 %240  ;;  %v286_v31 = vmul.f32 0.00390625, %v265_v58 }
  0xe1   : > { %v278_v30 = vmul.f32 0.00390625, %v241_v10  ;;  %v347_v19 = vsel %vm346_vm4, %v345_v52, %v340_v37  ;;  %v602_v52 = vsub.s32 1, %v1304_v23 }
  0xe2   : > { %v396_v48 = vrot.slane %v286_v31, %v351_v57  ;;  %v392_v31 = vsel %vm346_vm4, %v391_v28, %v387_v47  ;;  %v567_v28 = vsub.s32 0, %v1304_v23 }
  0xe3   : > { %v268_v46 = vpop.xlane.xlu1 %267  ;;  %v352_v56 = vrot.slane %v278_v30, %v351_v57 }
  0xe4   : > { %v287_v22 = vmul.f32 0.00390625, %v268_v46  ;;  %v244_v36 = vpop.xlane.xlu0 %243  ;;  %v397_v54 = vsel %vm353_vm5, %v396_v48, %v392_v31 }
  0xe5   : > { %v279_v41 = vmul.f32 0.00390625, %v244_v36  ;;  %v354_v57 = vsel %vm353_vm5, %v352_v56, %v347_v19 }
  0xe6   : > { %v401_v58 = vrot.slane %v287_v22, %v358_v3 }
  0xe7   : > { %v271_v50 = vpop.xlane.xlu1 %270  ;;  %v359_v53 = vrot.slane %v279_v41, %v358_v3 }
  0xe8   : > { %v288_v43 = vmul.f32 0.00390625, %v271_v50  ;;  %v247_v36 = vpop.xlane.xlu0 %246  ;;  %v402_v60 = vsel %vm360_vm6, %v401_v58, %v397_v54 }
  0xe9   : > { %v280_v42 = vmul.f32 0.00390625, %v247_v36  ;;  %v361_v10 = vsel %vm360_vm6, %v359_v53, %v354_v57  ;;  %v1473_v57 = vld [vmem:[#allocation8_spill] sm:$0xff] }
  0xea   : > { %v406_v30 = vrot.slane %v288_v43, %v365_v17 }
  0xeb   : > { %v366_v61 = vrot.slane %v280_v42, %v365_v17 }
  0xec   : > { %v407_v29 = vsel %vm367_vm7, %v406_v30, %v402_v60 }
  0xed   : > { %v368_v34 = vsel %vm367_vm7, %v366_v61, %v361_v10  ;;  %v1475_v10 = vld [vmem:[#allocation12_spill] sm:$0xff] }
  0xee   : > { %v409_v3 = vsel %vm408_vm8, %v407_v29, %v368_v34  ;;  %v1476_v29 = vld [vmem:[#allocation9_spill] sm:$0xff] }
  0xef   : > { %838 = vmatmul.mubr.msk.f32.vlgmr.msra.gmra.mrb[0].mxu0 %vm410_vm9, %v409_v3  ;;  %v1477_v3 = vld [vmem:[#allocation10_spill] sm:$0xff] }
 0x1c2   : > { %v479_v40 = vpop.f32.mrb[0].mxu0 }
 0x1c3   : > { %v483_v7 = vmax.f32 %v479_v40, 0.0  ;;  %v839_v11 = vpop.f32.mrb[1].mxu0  ;;  %v1478_v40 = vld [vmem:[#allocation13_spill] sm:$0xff] }
 0x1c4   : > { %v1479_v11 = vld [vmem:[#allocation14_spill] sm:$0xff] }
 0x1c5   : > { %843 = vmatmul.mubr.msk.f32.vlgmr.msra.gmra.mrb[0].mxu1 %vm484_vm11, %v483_v7 }
 0x298   : > { %v558_v46 = vpop.f32.mrb[0].mxu1 }
 0x299   : > { %v559_v62 = vadd.f32 3.0, %v558_v46  ;;  %v844_v16 = vpop.f32.mrb[1].mxu1 }
 0x29b   : > { %v562_v22 = vmax.f32 %v559_v62, 0.0 }
 0x29d   : > { %v563_v63 = vmin.f32 %v562_v22, 6.0 }
 0x29f   : > { %v564_v41 = vmul.f32 0.16666667, %v563_v63 }
 0x2a1   : > { %v568_v51 = vrot.slane %v564_v41, %v567_v28  ;;  %v603_v48 = vrot.slane %v564_v41, %v602_v52 }
 0x2a3   : > { %574 = vbcast.lane.b32.xlu1 %v568_v51, 264  ;;  %570 = vbcast.lane.b32.xlu0 %v568_v51, 256 }
 0x2a7   : > { %578 = vbcast.lane.b32.xlu1 %v568_v51, 272  ;;  %586 = vbcast.lane.b32.xlu0 %v568_v51, 288 }
 0x2ab   : > { %582 = vbcast.lane.b32.xlu1 %v568_v51, 280  ;;  %594 = vbcast.lane.b32.xlu0 %v568_v51, 304 }
 0x2af   : > { %590 = vbcast.lane.b32.xlu1 %v568_v51, 296  ;;  %605 = vbcast.lane.b32.xlu0 %v603_v48, 256 }
 0x2b3   : > { %598 = vbcast.lane.b32.xlu1 %v568_v51, 312  ;;  %613 = vbcast.lane.b32.xlu0 %v603_v48, 272 }
 0x2b7   : > { %609 = vbcast.lane.b32.xlu1 %v603_v48, 264  ;;  %621 = vbcast.lane.b32.xlu0 %v603_v48, 288 }
 0x2bb   : > { %617 = vbcast.lane.b32.xlu1 %v603_v48, 280  ;;  %629 = vbcast.lane.b32.xlu0 %v603_v48, 304 }
 0x2bf   : > { %625 = vbcast.lane.b32.xlu1 %v603_v48, 296 }
 0x2c3   : > { %633 = vbcast.lane.b32.xlu1 %v603_v48, 312 }
 0x315   : > { %v575_v17 = vpop.permute.xlu1 %574  ;;  %v571_v49 = vpop.permute.xlu0 %570 }
 0x316   : > { %v637_v55 = vmul.f32 %v575_v17, %v1175_v8  ;;  %v638_v23 = vmul.f32 %v575_v17, %v1178_v9  ;;  %v635_v56 = vmul.f32 %v571_v49, %v1159_v2  ;;  %v636_v58 = vmul.f32 %v571_v49, %v1164_v4 }
 0x318   : > { %669 = vst [vmem:[%s1337_s6 + $0x10] sm:$0xff] %v637_v55  ;;  %670 = vst [vmem:[%s1337_s6 + $0x18] sm:$0xff] %v638_v23 }
 0x319   : > { %667 = vst [vmem:[%s1337_s6] sm:$0xff] %v635_v56  ;;  %668 = vst [vmem:[%s1337_s6 + $0x8] sm:$0xff] %v636_v58  ;;  %v579_v8 = vpop.permute.xlu1 %578  ;;  %v587_v2 = vpop.permute.xlu0 %586 }
 0x31a   : > { %v639_v4 = vmul.f32 %v579_v8, %v1191_v14  ;;  %v640_v9 = vmul.f32 %v579_v8, %v1194_v15  ;;  %v643_v50 = vmul.f32 %v587_v2, %v1223_v26  ;;  %v644_v59 = vmul.f32 %v587_v2, %v1226_v27 }
 0x31c   : > { %671 = vst [vmem:[%s1337_s6 + $0x20] sm:$0xff] %v639_v4  ;;  %672 = vst [vmem:[%s1337_s6 + $0x28] sm:$0xff] %v640_v9 }
 0x31d   : > { %675 = vst [vmem:[%s1337_s6 + $0x40] sm:$0xff] %v643_v50  ;;  %676 = vst [vmem:[%s1337_s6 + $0x48] sm:$0xff] %v644_v59  ;;  %v583_v47 = vpop.permute.xlu1 %582  ;;  %v595_v53 = vpop.permute.xlu0 %594 }
 0x31e   : > { %v641_v43 = vmul.f32 %v583_v47, %v1207_v20  ;;  %v642_v14 = vmul.f32 %v583_v47, %v1210_v21  ;;  %v647_v15 = vmul.f32 %v595_v53, %v1255_v38  ;;  %v648_v26 = vmul.f32 %v595_v53, %v1258_v39 }
 0x320   : > { %673 = vst [vmem:[%s1337_s6 + $0x30] sm:$0xff] %v641_v43  ;;  %674 = vst [vmem:[%s1337_s6 + $0x38] sm:$0xff] %v642_v14 }
 0x321   : > { %679 = vst [vmem:[%s1337_s6 + $0x60] sm:$0xff] %v647_v15  ;;  %680 = vst [vmem:[%s1337_s6 + $0x68] sm:$0xff] %v648_v26  ;;  %v591_v27 = vpop.permute.xlu1 %590  ;;  %v606_v36 = vpop.permute.xlu0 %605 }
 0x322   : > { %v645_v37 = vmul.f32 %v591_v27, %v1239_v32  ;;  %v646_v20 = vmul.f32 %v591_v27, %v1242_v33  ;;  %v651_v21 = vmul.f32 %v606_v36, %v1153_v0  ;;  %v652_v38 = vmul.f32 %v606_v36, %v1156_v1 }
 0x324   : > { %677 = vst [vmem:[%s1337_s6 + $0x50] sm:$0xff] %v645_v37  ;;  %678 = vst [vmem:[%s1337_s6 + $0x58] sm:$0xff] %v646_v20 }
 0x325   : > { %683 = vst [vmem:[%s1337_s6 + $0x80] sm:$0xff] %v651_v21  ;;  %684 = vst [vmem:[%s1337_s6 + $0x88] sm:$0xff] %v652_v38  ;;  %v599_v39 = vpop.permute.xlu1 %598  ;;  %v614_v31 = vpop.permute.xlu0 %613 }
 0x326   : > { %v649_v42 = vmul.f32 %v599_v39, %v1271_v44  ;;  %v650_v32 = vmul.f32 %v599_v39, %v1274_v45  ;;  %v655_v33 = vmul.f32 %v614_v31, %v1185_v12  ;;  %v656_v0 = vmul.f32 %v614_v31, %v1188_v13 }
 0x328   : > { %681 = vst [vmem:[%s1337_s6 + $0x70] sm:$0xff] %v649_v42  ;;  %682 = vst [vmem:[%s1337_s6 + $0x78] sm:$0xff] %v650_v32 }
 0x329   : > { %687 = vst [vmem:[%s1337_s6 + $0xa0] sm:$0xff] %v655_v33  ;;  %688 = vst [vmem:[%s1337_s6 + $0xa8] sm:$0xff] %v656_v0  ;;  %v610_v1 = vpop.permute.xlu1 %609  ;;  %v622_v19 = vpop.permute.xlu0 %621 }
 0x32a   : > { %v653_v54 = vmul.f32 %v610_v1, %v1167_v5  ;;  %v654_v44 = vmul.f32 %v610_v1, %v1170_v6  ;;  %v659_v45 = vmul.f32 %v622_v19, %v1217_v24  ;;  %v660_v12 = vmul.f32 %v622_v19, %v1220_v25  ;;  %v1474_v6 = vld [vmem:[#allocation11_spill] sm:$0xff] }
 0x32c   : > { %685 = vst [vmem:[%s1337_s6 + $0x90] sm:$0xff] %v653_v54  ;;  %686 = vst [vmem:[%s1337_s6 + $0x98] sm:$0xff] %v654_v44 }
 0x32d   : > { %691 = vst [vmem:[%s1337_s6 + $0xc0] sm:$0xff] %v659_v45  ;;  %692 = vst [vmem:[%s1337_s6 + $0xc8] sm:$0xff] %v660_v12  ;;  %v618_v13 = vpop.permute.xlu1 %617  ;;  %v630_v30 = vpop.permute.xlu0 %629 }
 0x32e   : > { %v657_v5 = vmul.f32 %v618_v13, %v1201_v18  ;;  %v658_v60 = vmul.f32 %v618_v13, %v1473_v57  ;;  %v663_v61 = vmul.f32 %v630_v30, %v1474_v6  ;;  %v664_v24 = vmul.f32 %v630_v30, %v1475_v10 }
 0x330   : > { %689 = vst [vmem:[%s1337_s6 + $0xb0] sm:$0xff] %v657_v5  ;;  %690 = vst [vmem:[%s1337_s6 + $0xb8] sm:$0xff] %v658_v60 }
 0x331   : > { %695 = vst [vmem:[%s1337_s6 + $0xe0] sm:$0xff] %v663_v61  ;;  %696 = vst [vmem:[%s1337_s6 + $0xe8] sm:$0xff] %v664_v24  ;;  %v626_v25 = vpop.permute.xlu1 %625 }
 0x332   : > { %v661_v34 = vmul.f32 %v626_v25, %v1476_v29  ;;  %v662_v35 = vmul.f32 %v626_v25, %v1477_v3 }
 0x334   : > { %693 = vst [vmem:[%s1337_s6 + $0xd0] sm:$0xff] %v661_v34  ;;  %694 = vst [vmem:[%s1337_s6 + $0xd8] sm:$0xff] %v662_v35 }
 0x335   : > { %v634_v18 = vpop.permute.xlu1 %633 }
 0x336   : > { %v665_v7 = vmul.f32 %v634_v18, %v1478_v40  ;;  %v666_v46 = vmul.f32 %v634_v18, %v1479_v11 }
 0x338   : > { %697 = vst [vmem:[%s1337_s6 + $0xf0] sm:$0xff] %v665_v7  ;;  %698 = vst [vmem:[%s1337_s6 + $0xf8] sm:$0xff] %v666_v46 }
 0x339   : > { %953 = shalt.err (!%p950_p1)
}
 0x33a   : > { %s954_s28 = scalar_lea.hbm %s1400_s19, 4096  ;;  %s958_s10 = scalar_lea.hbm %s1452_s3, 16384 }
 0x33b   : > { %p955_p3 = scmp.ne.s32.totalorder %s1400_s19, %s954_s28  ;;  %p959_p0 = scmp.lt.u32.totalorder %s1400_s19, %s1452_s3 }
 0x33c   : > { %p960_p2 = scmp.lt.u32.totalorder %s958_s10, %s954_s28  ;;  %p962_p6 = scmp.lt.u32.totalorder %s954_s28, %s1400_s19 }
 0x33d   : > { %p956_p4 = pnand %p955_p3, %p1480_p10 }
 0x33e   : > { %p961_p7 = por %p960_p2, %p959_p0 }
 0x33f   : > { %p957_p5 = pneg %p956_p4 }
 0x340   : > { %p963_p11 = por %p962_p6, %p961_p7 }
 0x342   : > { %p964_p12 = pnand %p963_p11, %p957_p5 }
 0x344   : > { %967 = shalt.err (!%p964_p12)
}
 0x345   : > { %s1015_s4 = smov 256   ;;  %s1016_s6 = smov 16  }
 0x346   : > { %859 = dma.vmem_to_hbm [thread:$0]  (%p1480_p10), %s1402_s7, 4096, %s1400_s19, %s700_s16, %s1015_s4, %s1015_s4, %s1016_s6  }
 0x347 PF: > { %p870_p8 = scmp.ge.s32.totalorder %s1006_s15, 2  ;;  %s729_s9 = sand.u32 1, %s994_s12  }
 0x348   : > { %p1481_p9 = scmp.ne.s32.totalorder %s1464_s25, 0  ;;  %s730_s8 = scalar_lea.sflag [#allocation4], %s729_s9 }
 0x34a   : > { %p866_p13 = pnand %p870_p8, %p1481_p9 }
 0x34c   : > { %989 = dma.done.wait (!%p866_p13), %s730_s8, 4096  }
 0x34d   : > { %991 = vsyncadd (!%p866_p13), %s730_s8, 4294963200  ;;  %p16_p1 = scmp.ge.s32.totalorder %s1062_s18, 6   ;;  %s1482_s12 = smov %s998_s13 }
 0x34e   : > { %s1483_s13 = smov %s1002_s14  ;;  %s1484_s14 = smov %s1074_s21 }
 0x34f   : > { %s1485_s15 = smov %s1062_s18  ;;  %18 = sbr.rel (!%p16_p1) target bundleno = 5 (0x5), region = 77 }
 0x356   :  { %735 = vsyncpa [#allocation3], 1 }
 0x357   :  { %737 = vsyncpa [#allocation3 + $0x1], 1 }
 0x358   :  { %738 = vsyncpa [#allocation4], 1 }
 0x359   :  { %740 = vsyncpa [#allocation4 + $0x1], 1 }

</bundles_post_ra>
